<compile_context>
chip_gen: v7x
topology: tpu7x:2x2x1
jax: 0.10.0
libtpu: 0.0.40
codegen_flags: <defaults>
</compile_context>

<pallas_src>
import functools

import jax
import jax.numpy as jnp
from jax.experimental import pallas as pl
from jax.experimental.pallas import tpu as pltpu


# ----------------------------------------------------------------------------
# Kernel 1: fused Q/K/V projection (row-tiled, weights resident)
# ----------------------------------------------------------------------------
def proj_kernel(q_ref, k_ref, v_ref, wq_ref, wk_ref, wv_ref,
                qo_ref, ko_ref, vo_ref, *, inv_scale):
    q = q_ref[...]   # [TR, H] bf16
    k = k_ref[...]
    v = v_ref[...]

    Q = jnp.dot(q, wq_ref[...], preferred_element_type=jnp.float32)
    K = jnp.dot(k, wk_ref[...], preferred_element_type=jnp.float32)
    V = jnp.dot(v, wv_ref[...], preferred_element_type=jnp.float32)

    # Fold the 1/sqrt(head_dim) attention scale into Q once.
    qo_ref[...] = (Q * inv_scale).astype(qo_ref.dtype)   # bf16 (MXU operand later)
    ko_ref[...] = K.astype(ko_ref.dtype)                  # bf16 (MXU operand later)
    vo_ref[...] = V.astype(vo_ref.dtype)                  # f32  (residual path)


# ----------------------------------------------------------------------------
# Kernel 2: flash attention (online softmax over KV tiles) + fc + residual + LN
# ----------------------------------------------------------------------------
def flash_epilogue_kernel(qh_ref, kh_ref, vh_ref, vres_ref,
                          wfc_ref, bfc_ref, gamma_ref, beta_ref,
                          out_ref, m_sc, l_sc, acc_sc,
                          *, n_heads, head_dim, eps):
    j = pl.program_id(1)

    @pl.when(j == 0)
    def _init():
        m_sc[...] = jnp.full(m_sc.shape, -jnp.inf, jnp.float32)
        l_sc[...] = jnp.zeros(l_sc.shape, jnp.float32)
        acc_sc[...] = jnp.zeros(acc_sc.shape, jnp.float32)

    qh = qh_ref[...]   # [nh, TQ, dh] bf16 (already scaled by 1/sqrt(dh))
    kh = kh_ref[...]   # [nh, TK, dh] bf16
    vh = vh_ref[...]   # [nh, TK, dh] bf16

    # Batched per-head score matmul on the MXU (no per-head Python slicing,
    # no explicit K transpose, no lane-axis concatenation).
    s = jnp.einsum('hqd,hkd->hqk', qh, kh,
                   preferred_element_type=jnp.float32)     # [nh, TQ, TK] f32

    m_prev = m_sc[...]
    m_new = jnp.maximum(m_prev, jnp.max(s, axis=-1, keepdims=True))
    alpha = jnp.exp(m_prev - m_new)
    p = jnp.exp(s - m_new)
    l_sc[...] = alpha * l_sc[...] + jnp.sum(p, axis=-1, keepdims=True)
    acc_sc[...] = alpha * acc_sc[...] + jnp.einsum(
        'hqk,hkd->hqd', p.astype(jnp.bfloat16), vh,
        preferred_element_type=jnp.float32)                # [nh, TQ, dh] f32
    m_sc[...] = m_new

    @pl.when(j == pl.num_programs(1) - 1)
    def _finalize():
        # Normalize once at the end (EUP reciprocal is ~free next to exp).
        ctx = acc_sc[...] * pl.reciprocal(l_sc[...], approx=True)  # [nh,TQ,dh]

        wfc = wfc_ref[...]                                 # [H, H] bf16 ([in, out])
        # Output projection without re-assembling a [TQ, H] context slab
        # (avoids an in-kernel head transpose): x = sum_h ctx[h] @ Wfc[h-rows].
        x = jnp.zeros(out_ref.shape, jnp.float32)
        for h in range(n_heads):
            x = x + jnp.dot(ctx[h].astype(jnp.bfloat16),
                            wfc[h * head_dim:(h + 1) * head_dim, :],
                            preferred_element_type=jnp.float32)

        # Residual = w_v(value) for the same rows (f32), bias, LayerNorm
        # (PyTorch semantics: biased variance, eps inside sqrt).
        y = x + bfc_ref[...] + vres_ref[...]
        mean = jnp.mean(y, axis=-1, keepdims=True)
        var = jnp.mean(jnp.square(y - mean), axis=-1, keepdims=True)
        y_norm = (y - mean) * jax.lax.rsqrt(var + jnp.float32(eps))
        out_ref[...] = (y_norm * gamma_ref[...] + beta_ref[...]).astype(out_ref.dtype)


# ----------------------------------------------------------------------------
# Wrapper
# ----------------------------------------------------------------------------
def mha_fusion(query, key, value, params, n_heads, *,
               tr=None, tq=None, tk=None, eps=1e-5):
    S, H = query.shape
    assert H % n_heads == 0
    dh = H // n_heads

    # Tile sizes (largest block that divides S, capped; tiny test -> one tile).
    tr = tr or min(256, S)
    tq = tq or min(256, S)
    tk = tk or min(512, S)
    assert S % tr == 0 and S % tq == 0 and S % tk == 0, "S must be divisible by tiles"

    f32, bf16 = jnp.float32, jnp.bfloat16
    inv_scale = float(1.0 / (dh ** 0.5))

    # Pre-transpose Linear weights ([out,in] -> [in,out]) and cast MXU operands
    # to bf16 (f32 accumulation stays inside the kernels).
    wq_t = params["w_q"].T.astype(bf16)
    wk_t = params["w_k"].T.astype(bf16)
    wv_t = params["w_v"].T.astype(bf16)
    wfc_t = params["fc_w"].T.astype(bf16)
    bfc = params["fc_b"].reshape(1, H).astype(f32)
    gamma = params["ln_w"].reshape(1, H).astype(f32)
    beta = params["ln_b"].reshape(1, H).astype(f32)

    cparams_1d = pltpu.CompilerParams(
        dimension_semantics=("parallel",),
        vmem_limit_bytes=48 * 1024 * 1024)
    cparams_2d = pltpu.CompilerParams(
        dimension_semantics=("parallel", "arbitrary"),
        vmem_limit_bytes=48 * 1024 * 1024)

    # --- Kernel 1: Q/K/V projections, row-tiled grid, weights resident -------
    row_spec = pl.BlockSpec((tr, H), lambda i: (i, 0))
    w_spec = pl.BlockSpec((H, H), lambda i: (0, 0))
    qp, kp, vp = pl.pallas_call(
        functools.partial(proj_kernel, inv_scale=inv_scale),
        out_shape=(jax.ShapeDtypeStruct((S, H), bf16),   # Q (scaled)
                   jax.ShapeDtypeStruct((S, H), bf16),   # K
                   jax.ShapeDtypeStruct((S, H), f32)),   # V (residual path)
        grid_spec=pltpu.PrefetchScalarGridSpec(
            num_scalar_prefetch=0, grid=(S // tr,),
            in_specs=[row_spec, row_spec, row_spec, w_spec, w_spec, w_spec],
            out_specs=[row_spec, row_spec, row_spec]),
        compiler_params=cparams_1d,
    )(query.astype(bf16), key.astype(bf16), value.astype(bf16),
      wq_t, wk_t, wv_t)

    # Head-major layout [n_heads, S, dh] for the attention kernel
    # (wrapper-side layout plumbing; keeps the kernel free of transposes).
    qh = qp.reshape(S, n_heads, dh).transpose(1, 0, 2)
    kh = kp.reshape(S, n_heads, dh).transpose(1, 0, 2)
    vh = vp.astype(bf16).reshape(S, n_heads, dh).transpose(1, 0, 2)

    # --- Kernel 2: flash attention + fused epilogue ---------------------------
    # NOTE: for H < 128 (tiny demo shape) the output stores are masked partial
    # stores; realistic hid_dim is a multiple of 128 and stays lane-dense.
    out = pl.pallas_call(
        functools.partial(flash_epilogue_kernel,
                          n_heads=n_heads, head_dim=dh, eps=eps),
        out_shape=jax.ShapeDtypeStruct((S, H), f32),
        grid_spec=pltpu.PrefetchScalarGridSpec(
            num_scalar_prefetch=0, grid=(S // tq, S // tk),
            in_specs=[
                pl.BlockSpec((n_heads, tq, dh), lambda i, j: (0, i, 0)),  # Qh
                pl.BlockSpec((n_heads, tk, dh), lambda i, j: (0, j, 0)),  # Kh
                pl.BlockSpec((n_heads, tk, dh), lambda i, j: (0, j, 0)),  # Vh
                pl.BlockSpec((tq, H), lambda i, j: (i, 0)),               # residual V
                pl.BlockSpec((H, H), lambda i, j: (0, 0)),                # fc weight
                pl.BlockSpec((1, H), lambda i, j: (0, 0)),                # fc bias
                pl.BlockSpec((1, H), lambda i, j: (0, 0)),                # ln gamma
                pl.BlockSpec((1, H), lambda i, j: (0, 0)),                # ln beta
            ],
            out_specs=pl.BlockSpec((tq, H), lambda i, j: (i, 0)),
            scratch_shapes=[
                pltpu.VMEM((n_heads, tq, 1), f32),    # running max m
                pltpu.VMEM((n_heads, tq, 1), f32),    # running sum l
                pltpu.VMEM((n_heads, tq, dh), f32),   # running weighted acc
            ]),
        compiler_params=cparams_2d,
    )(qh, kh, vh, vp, wfc_t, bfc, gamma, beta)
    return out


# ----------------------------------------------------------------------------
# Pure-JAX reference (mirrors the PyTorch forward, dropout = identity)
# ----------------------------------------------------------------------------
def mha_fusion_ref(query, key, value, params, n_heads, eps=1e-5):
    H = query.shape[-1]
    dh = H // n_heads
    Q = query @ params["w_q"].T
    K = key @ params["w_k"].T
    V = value @ params["w_v"].T
    residual = V
    Qh = Q.reshape(-1, n_heads, dh).transpose(1, 0, 2)
    Kh = K.reshape(-1, n_heads, dh).transpose(1, 0, 2)
    Vh = V.reshape(-1, n_heads, dh).transpose(1, 0, 2)
    attn = jnp.einsum("hqd,hkd->hqk", Qh, Kh) / jnp.sqrt(jnp.float32(dh))
    attn = jax.nn.softmax(attn, axis=-1)
    x = jnp.einsum("hqk,hkd->hqd", attn, Vh)
    x = x.transpose(1, 0, 2).reshape(-1, H)
    x = x @ params["fc_w"].T + params["fc_b"]
    y = x + residual
    mean = jnp.mean(y, axis=-1, keepdims=True)
    var = jnp.mean((y - mean) ** 2, axis=-1, keepdims=True)
    return (y - mean) / jnp.sqrt(var + eps) * params["ln_w"] + params["ln_b"]


if __name__ == "__main__":
    S, H, n_heads = 8, 32, 4  # seq=8, hid_dim=32, 4 heads (head_dim=8)

    key0 = jax.random.PRNGKey(0)
    k_q, k_k, k_v, k_wq, k_wk, k_wv, k_fw, k_fb = jax.random.split(key0, 8)

    query = jax.random.normal(k_q, (S, H), jnp.float32)
    key_in = jax.random.normal(k_k, (S, H), jnp.float32)
    value = jax.random.normal(k_v, (S, H), jnp.float32)

    params = {
        "w_q": jax.random.normal(k_wq, (H, H), jnp.float32) * 0.1,
        "w_k": jax.random.normal(k_wk, (H, H), jnp.float32) * 0.1,
        "w_v": jax.random.normal(k_wv, (H, H), jnp.float32) * 0.1,
        "fc_w": jax.random.normal(k_fw, (H, H), jnp.float32) * 0.1,
        "fc_b": jax.random.normal(k_fb, (H,), jnp.float32) * 0.1,
        "ln_w": jnp.ones((H,), jnp.float32),   # PyTorch LayerNorm default init
        "ln_b": jnp.zeros((H,), jnp.float32),
    }

    out = mha_fusion(query, key_in, value, params, n_heads)
    out = jax.block_until_ready(out)

    ref = mha_fusion_ref(query, key_in, value, params, n_heads)
    assert out.shape == (S, H)
    # bf16 MXU operands (f32 accumulation) -> loosened tolerance vs f32 reference.
    assert jnp.allclose(out, ref, atol=5e-2, rtol=5e-2), "mismatch vs reference"

    print("KERNEL_OK")
</pallas_src>

<mosaic_0001>
module attributes {stable_mosaic.version = 11 : i64} {
  func.func @proj_kernel(%arg0: i32, %arg1: memref<8x32xbf16, #tpu.memory_space<vmem>>, %arg2: memref<8x32xbf16, #tpu.memory_space<vmem>>, %arg3: memref<8x32xbf16, #tpu.memory_space<vmem>>, %arg4: memref<32x32xbf16, #tpu.memory_space<vmem>>, %arg5: memref<32x32xbf16, #tpu.memory_space<vmem>>, %arg6: memref<32x32xbf16, #tpu.memory_space<vmem>>, %arg7: memref<8x32xbf16, #tpu.memory_space<vmem>>, %arg8: memref<8x32xbf16, #tpu.memory_space<vmem>>, %arg9: memref<8x32xf32, #tpu.memory_space<vmem>>) attributes {dimension_semantics = [#tpu.dimension_semantics<parallel>], iteration_bounds = array<i64: 1>, scalar_prefetch = 0 : i64, scratch_operands = 0 : i64, tpu.core_type = #tpu.core_type<tc>, window_params = [{transform_indices = @transform_0, window_bounds = array<i64: 8, 32>}, {transform_indices = @transform_1, window_bounds = array<i64: 8, 32>}, {transform_indices = @transform_2, window_bounds = array<i64: 8, 32>}, {pipeline_mode = #tpu.pipeline_mode<synchronous>, transform_indices = @transform_3, window_bounds = array<i64: 32, 32>}, {pipeline_mode = #tpu.pipeline_mode<synchronous>, transform_indices = @transform_4, window_bounds = array<i64: 32, 32>}, {pipeline_mode = #tpu.pipeline_mode<synchronous>, transform_indices = @transform_5, window_bounds = array<i64: 32, 32>}, {transform_indices = @transform_6, window_bounds = array<i64: 8, 32>}, {transform_indices = @transform_7, window_bounds = array<i64: 8, 32>}, {transform_indices = @transform_8, window_bounds = array<i64: 8, 32>}]} {
    %c0 = arith.constant 0 : index
    %c0_0 = arith.constant 0 : index
    %0 = vector.load %arg1[%c0, %c0_0] : memref<8x32xbf16, #tpu.memory_space<vmem>>, vector<8x32xbf16>
    %c0_1 = arith.constant 0 : index
    %c0_2 = arith.constant 0 : index
    %1 = vector.load %arg2[%c0_1, %c0_2] : memref<8x32xbf16, #tpu.memory_space<vmem>>, vector<8x32xbf16>
    %c0_3 = arith.constant 0 : index
    %c0_4 = arith.constant 0 : index
    %2 = vector.load %arg3[%c0_3, %c0_4] : memref<8x32xbf16, #tpu.memory_space<vmem>>, vector<8x32xbf16>
    %c0_5 = arith.constant 0 : index
    %c0_6 = arith.constant 0 : index
    %3 = vector.load %arg4[%c0_5, %c0_6] : memref<32x32xbf16, #tpu.memory_space<vmem>>, vector<32x32xbf16>
    %cst = arith.constant dense<0.000000e+00> : vector<8x32xf32>
    %4 = tpu.matmul %0, %3, %cst {dimension_numbers = #tpu.dot_dimension_numbers<[1], [0], [0], [1], [0, 0, 1, 1], [], []>} : vector<8x32xbf16>, vector<32x32xbf16>, vector<8x32xf32> -> vector<8x32xf32>
    %c0_7 = arith.constant 0 : index
    %c0_8 = arith.constant 0 : index
    %5 = vector.load %arg5[%c0_7, %c0_8] : memref<32x32xbf16, #tpu.memory_space<vmem>>, vector<32x32xbf16>
    %cst_9 = arith.constant dense<0.000000e+00> : vector<8x32xf32>
    %6 = tpu.matmul %1, %5, %cst_9 {dimension_numbers = #tpu.dot_dimension_numbers<[1], [0], [0], [1], [0, 0, 1, 1], [], []>} : vector<8x32xbf16>, vector<32x32xbf16>, vector<8x32xf32> -> vector<8x32xf32>
    %c0_10 = arith.constant 0 : index
    %c0_11 = arith.constant 0 : index
    %7 = vector.load %arg6[%c0_10, %c0_11] : memref<32x32xbf16, #tpu.memory_space<vmem>>, vector<32x32xbf16>
    %cst_12 = arith.constant dense<0.000000e+00> : vector<8x32xf32>
    %8 = tpu.matmul %2, %7, %cst_12 {dimension_numbers = #tpu.dot_dimension_numbers<[1], [0], [0], [1], [0, 0, 1, 1], [], []>} : vector<8x32xbf16>, vector<32x32xbf16>, vector<8x32xf32> -> vector<8x32xf32>
    %cst_13 = arith.constant 0.353553385 : f32
    %9 = vector.broadcast %cst_13 : f32 to vector<8x32xf32>
    %10 = arith.mulf %4, %9 : vector<8x32xf32>
    %11 = arith.truncf %10 : vector<8x32xf32> to vector<8x32xbf16>
    %c0_14 = arith.constant 0 : index
    %c0_15 = arith.constant 0 : index
    %12 = vector.load %arg7[%c0_14, %c0_15] : memref<8x32xbf16, #tpu.memory_space<vmem>>, vector<8x32xbf16>
    tpu.vector_store %arg7[%c0_14, %c0_15], %11 {strides = array<i32>} : memref<8x32xbf16, #tpu.memory_space<vmem>>, vector<8x32xbf16>,
    %13 = arith.truncf %6 : vector<8x32xf32> to vector<8x32xbf16>
    %c0_16 = arith.constant 0 : index
    %c0_17 = arith.constant 0 : index
    %14 = vector.load %arg8[%c0_16, %c0_17] : memref<8x32xbf16, #tpu.memory_space<vmem>>, vector<8x32xbf16>
    tpu.vector_store %arg8[%c0_16, %c0_17], %13 {strides = array<i32>} : memref<8x32xbf16, #tpu.memory_space<vmem>>, vector<8x32xbf16>,
    %c0_18 = arith.constant 0 : index
    %c0_19 = arith.constant 0 : index
    %15 = vector.load %arg9[%c0_18, %c0_19] : memref<8x32xf32, #tpu.memory_space<vmem>>, vector<8x32xf32>
    tpu.vector_store %arg9[%c0_18, %c0_19], %8 {strides = array<i32>} : memref<8x32xf32, #tpu.memory_space<vmem>>, vector<8x32xf32>,
    return
  }
  func.func @transform_0(%arg0: i32) -> (i32, i32) {
    %c0_i32 = arith.constant 0 : i32
    %c0_i32_0 = arith.constant 0 : i32
    return %arg0, %c0_i32 : i32, i32
  }
  func.func @transform_1(%arg0: i32) -> (i32, i32) {
    %c0_i32 = arith.constant 0 : i32
    %c0_i32_0 = arith.constant 0 : i32
    return %arg0, %c0_i32 : i32, i32
  }
  func.func @transform_2(%arg0: i32) -> (i32, i32) {
    %c0_i32 = arith.constant 0 : i32
    %c0_i32_0 = arith.constant 0 : i32
    return %arg0, %c0_i32 : i32, i32
  }
  func.func @transform_3(%arg0: i32) -> (i32, i32) {
    %c0_i32 = arith.constant 0 : i32
    %c0_i32_0 = arith.constant 0 : i32
    %c0_i32_1 = arith.constant 0 : i32
    return %c0_i32, %c0_i32_0 : i32, i32
  }
  func.func @transform_4(%arg0: i32) -> (i32, i32) {
    %c0_i32 = arith.constant 0 : i32
    %c0_i32_0 = arith.constant 0 : i32
    %c0_i32_1 = arith.constant 0 : i32
    return %c0_i32, %c0_i32_0 : i32, i32
  }
  func.func @transform_5(%arg0: i32) -> (i32, i32) {
    %c0_i32 = arith.constant 0 : i32
    %c0_i32_0 = arith.constant 0 : i32
    %c0_i32_1 = arith.constant 0 : i32
    return %c0_i32, %c0_i32_0 : i32, i32
  }
  func.func @transform_6(%arg0: i32) -> (i32, i32) {
    %c0_i32 = arith.constant 0 : i32
    %c0_i32_0 = arith.constant 0 : i32
    return %arg0, %c0_i32 : i32, i32
  }
  func.func @transform_7(%arg0: i32) -> (i32, i32) {
    %c0_i32 = arith.constant 0 : i32
    %c0_i32_0 = arith.constant 0 : i32
    return %arg0, %c0_i32 : i32, i32
  }
  func.func @transform_8(%arg0: i32) -> (i32, i32) {
    %c0_i32 = arith.constant 0 : i32
    %c0_i32_0 = arith.constant 0 : i32
    return %arg0, %c0_i32 : i32, i32
  }
}

</mosaic_0001>

<bundles_post_ra>
// kernel: tpu_custom_call.1
= control target key start
LH: loop header
LB: loop body
LE: loop exit
PB: predicated region body
PF: predicated region fallthrough
CT: control target
= control target key end

     0   :  { %14 = vsyncpa [#allocation3], 0  ;;  %s762_s0 = inlined_call_operand.hbm [shape: bf16[8,32], index: 0, kind: input, shape index: {}]   ;;  %s763_s1 = inlined_call_operand.hbm [shape: bf16[8,32], index: 1, kind: input, shape index: {}]   ;;  %s764_s2 = inlined_call_operand.hbm [shape: bf16[8,32], index: 2, kind: input, shape index: {}]   ;;  %s765_s3 = inlined_call_operand.hbm [shape: bf16[32,32], index: 3, kind: input, shape index: {}]   ;;  %s766_s4 = inlined_call_operand.hbm [shape: bf16[32,32], index: 4, kind: input, shape index: {}]   ;;  %s767_s5 = inlined_call_operand.vmem [shape: bf16[32,32], index: 5, kind: input, shape index: {}]   ;;  %s768_s6 = inlined_call_operand.hbm [shape: bf16[8,32], index: 6, kind: output, shape index: {0}]   ;;  %s769_s7 = inlined_call_operand.hbm [shape: bf16[8,32], index: 7, kind: output, shape index: {1}]   ;;  %s770_s8 = inlined_call_operand.hbm [shape: f32[8,32], index: 8, kind: output, shape index: {2}]  }
   0x1   :  { %15 = vsyncpa [#allocation6], 0 }
   0x2   :  { %16 = vsyncpa [#allocation9], 0 }
   0x3   :  { %17 = vsyncpa [#allocation4], 0 }
   0x4   :  { %18 = vsyncpa [#allocation13], 0  ;;  %s569_s27 = smov [#allocation5]   ;;  %s570_s29 = smov [#allocation8]  }
   0x5   :  { %s35_s28 = sshll.u32 %s569_s27, 4  ;;  %s54_s30 = sshll.u32 %s570_s29, 4  ;;  %s36_s28 = int_to_ptr.vmem [resolvable:$true] %s35_s28  ;;  %s626_s30 = int_to_ptr.vmem [resolvable:$true] %s54_s30 }
   0x6   :  { %s383_s11 = scalar_lea.hbm %s763_s1, 64 }
   0x7   :  { %p384_p0 = scmp.ne.s32.totalorder %s763_s1, %s383_s11  ;;  %p387_p1 = scmp.lt.u32.totalorder %s383_s11, %s763_s1 }
   0x9   :  { %p389_p2 = pnand %p387_p1, %p384_p0 }
   0xb   :  { %392 = shalt.err (!%p389_p2)
}
   0xc   :  { %s393_s16 = scalar_lea.vmem %s36_s28, 64  ;;  %p398_p4 = scmp.lt.s32.totalorder %s36_s28, %s36_s28 }
   0xd   :  { %p394_p3 = scmp.ne.s32.totalorder %s36_s28, %s393_s16  ;;  %p399_p5 = scmp.lt.s32.totalorder %s393_s16, %s393_s16 }
   0xf   :  { %p400_p6 = por %p399_p5, %p398_p4 }
  0x11   :  { %p401_p7 = pnand %p400_p6, %p394_p3 }
  0x13   :  { %404 = shalt.err (!%p401_p7)
}
  0x14   :  { %38 = dma.hbm_to_vmem [thread:$0]  %s763_s1, 64, %s36_s28, [#allocation6]  }
  0x15   :  { %s405_s21 = scalar_lea.hbm %s765_s3, 256 }
  0x16   :  { %p406_p8 = scmp.ne.s32.totalorder %s765_s3, %s405_s21  ;;  %p409_p9 = scmp.lt.u32.totalorder %s405_s21, %s765_s3 }
  0x18   :  { %p411_p10 = pnand %p409_p9, %p406_p8 }
  0x1a   :  { %414 = shalt.err (!%p411_p10)
}
  0x1b   :  { %s415_s26 = scalar_lea.vmem %s626_s30, 256  ;;  %p420_p12 = scmp.lt.s32.totalorder %s626_s30, %s626_s30 }
  0x1c   :  { %p416_p11 = scmp.ne.s32.totalorder %s626_s30, %s415_s26  ;;  %p421_p13 = scmp.lt.s32.totalorder %s415_s26, %s415_s26 }
  0x1e   :  { %p422_p0 = por %p421_p13, %p420_p12 }
  0x20   :  { %p423_p1 = pnand %p422_p0, %p416_p11 }
  0x22   :  { %426 = shalt.err (!%p423_p1)
}
  0x23   :  { %s571_s1 = smov 64   ;;  %s572_s27 = smov 4  }
  0x24   :  { %60 = dma.hbm_to_vmem [thread:$0]  %s765_s3, 256, %s626_s30, [#allocation9], %s571_s1, %s571_s1, %s572_s27  }
  0x25   :  { %s573_s9 = smov [#allocation2]   ;;  %s574_s11 = smov [#allocation7]  }
  0x26   :  { %s25_s10 = sshll.u32 %s573_s9, 4  ;;  %s45_s12 = sshll.u32 %s574_s11, 4  ;;  %s26_s10 = int_to_ptr.vmem [resolvable:$true] %s25_s10  ;;  %s46_s12 = int_to_ptr.vmem [resolvable:$true] %s45_s12 }
  0x27   :  { %s427_s15 = scalar_lea.hbm %s762_s0, 64 }
  0x28   :  { %p428_p2 = scmp.ne.s32.totalorder %s762_s0, %s427_s15  ;;  %p431_p3 = scmp.lt.u32.totalorder %s427_s15, %s762_s0 }
  0x2a   :  { %p433_p4 = pnand %p431_p3, %p428_p2 }
  0x2c   :  { %436 = shalt.err (!%p433_p4)
}
  0x2d   :  { %s437_s3 = scalar_lea.vmem %s26_s10, 64  ;;  %p442_p6 = scmp.lt.s32.totalorder %s26_s10, %s26_s10 }
  0x2e   :  { %p438_p5 = scmp.ne.s32.totalorder %s26_s10, %s437_s3  ;;  %p443_p7 = scmp.lt.s32.totalorder %s437_s3, %s437_s3 }
  0x30   :  { %p444_p8 = por %p443_p7, %p442_p6 }
  0x32   :  { %p445_p9 = pnand %p444_p8, %p438_p5 }
  0x34   :  { %448 = shalt.err (!%p445_p9)
}
  0x35   :  { %28 = dma.hbm_to_vmem [thread:$0]  %s762_s0, 64, %s26_s10, [#allocation3]  }
  0x36   :  { %s449_s23 = scalar_lea.hbm %s764_s2, 64 }
  0x37   :  { %p450_p10 = scmp.ne.s32.totalorder %s764_s2, %s449_s23  ;;  %p453_p11 = scmp.lt.u32.totalorder %s449_s23, %s764_s2 }
  0x39   :  { %p455_p12 = pnand %p453_p11, %p450_p10 }
  0x3b   :  { %458 = shalt.err (!%p455_p12)
}
  0x3c   :  { %s459_s29 = scalar_lea.vmem %s46_s12, 64  ;;  %p464_p0 = scmp.lt.s32.totalorder %s46_s12, %s46_s12 }
  0x3d   :  { %p460_p13 = scmp.ne.s32.totalorder %s46_s12, %s459_s29  ;;  %p465_p1 = scmp.lt.s32.totalorder %s459_s29, %s459_s29 }
  0x3f   :  { %p466_p2 = por %p465_p1, %p464_p0 }
  0x41   :  { %p467_p3 = pnand %p466_p2, %p460_p13 }
  0x43   :  { %470 = shalt.err (!%p467_p3)
}
  0x44   :  { %48 = dma.hbm_to_vmem [thread:$0]  %s764_s2, 64, %s46_s12, [#allocation6]  }
  0x45   :  { %s575_s10 = smov [#allocation10]   ;;  %s471_s15 = scalar_lea.hbm %s766_s4, 256 }
  0x46   :  { %s66_s11 = sshll.u32 %s575_s10, 4  ;;  %p472_p4 = scmp.ne.s32.totalorder %s766_s4, %s471_s15  ;;  %s67_s11 = int_to_ptr.vmem [resolvable:$true] %s66_s11 }
  0x47   :  { %p475_p5 = scmp.lt.u32.totalorder %s471_s15, %s766_s4 }
  0x49   :  { %p477_p6 = pnand %p475_p5, %p472_p4 }
  0x4b   :  { %480 = shalt.err (!%p477_p6)
}
  0x4c   :  { %s481_s3 = scalar_lea.vmem %s67_s11, 256  ;;  %p486_p8 = scmp.lt.s32.totalorder %s67_s11, %s67_s11 }
  0x4d   :  { %p482_p7 = scmp.ne.s32.totalorder %s67_s11, %s481_s3  ;;  %p487_p9 = scmp.lt.s32.totalorder %s481_s3, %s481_s3 }
  0x4f   :  { %p488_p10 = por %p487_p9, %p486_p8 }
  0x51   :  { %p489_p11 = pnand %p488_p10, %p482_p7 }
  0x53   :  { %492 = shalt.err (!%p489_p11)
}
  0x54   :  { %72 = dma.hbm_to_vmem [thread:$0]  %s766_s4, 256, %s67_s11, [#allocation9], %s571_s1, %s571_s1, %s572_s27  }
  0x55   :  { %559 = dma.done.wait [#allocation3], 64  }
  0x56   :  { %560 = vsyncadd [#allocation3], 4294967232 }
  0x57   :  { %561 = dma.done.wait [#allocation6], 128  }
  0x58   :  { %562 = vsyncadd [#allocation6], 4294967168 }
  0x59   :  { %563 = dma.done.wait [#allocation9], 512  }
  0x5a   :  { %564 = vsyncadd [#allocation9], 4294966784  ;;  %v576_v0 = vmov 0.0   ;;  %vm577_vm0 = vmmov 0   ;;  %v377_v1 = vld [vmem:[#allocation8] sm:$0xff]   ;;  %v378_v2 = vld [vmem:[#allocation8 + $0x8] sm:$0xff]  }
  0x5b   :  { %341 = vmatprep.subr.bf16.mxu0 %v576_v0  ;;  %349 = vmatprep.subr.bf16.mxu1 %v576_v0  ;;  %v379_v3 = vld [vmem:[#allocation10] sm:$0xff]   ;;  %v380_v4 = vld [vmem:[#allocation10 + $0x8] sm:$0xff]   ;;  %vm110_vm1 = vcmask 261120   ;;  %v381_v6 = vld [vmem:[%s767_s5] sm:$0xff]   ;;  %s578_s20 = smov [#allocation12]   ;;  %s579_s22 = smov [#allocation11]  }
  0x5c   :  { %345 = vmatprep.mubr.msk.bf16.mxu0 %vm577_vm0, %v576_v0  ;;  %353 = vmatprep.mubr.msk.bf16.mxu1 %vm577_vm0, %v576_v0  ;;  %v91_v5 = vld [vmem:[#allocation2] sm:$0xf]  ;;  %v92_v7 = vld [vmem:[#allocation5] sm:$0xf]  ;;  %v382_v8 = vld [vmem:[%s767_s5 + $0x8] sm:$0xff]   ;;  %s295_s21 = sshll.u32 %s578_s20, 4  ;;  %s296_s21 = int_to_ptr.vmem [resolvable:$true] %s295_s21 }
  0x5d   :  { %342 = vmatpush3.bf16.msra.mxu0 %v377_v1  ;;  %350 = vmatpush3.bf16.msra.mxu1 %v379_v3  ;;  %v93_v9 = vld [vmem:[#allocation7] sm:$0xf]  ;;  %s285_s23 = sshll.u32 %s579_s22, 4  ;;  %vm274_vm2 = vcmask 257024   ;;  %s580_s5 = smov [#allocation14]   ;;  %s711_s23 = int_to_ptr.vmem [resolvable:$true] %s285_s23 }
  0x5e   :  { %343 = vmatprep.subr.bf16.mxu0 %v576_v0  ;;  %351 = vmatprep.subr.bf16.mxu1 %v576_v0  ;;  %s305_s24 = sshll.u32 %s580_s5, 4  ;;  %s493_s25 = scalar_lea.vmem %s296_s21, 64  ;;  %s713_s24 = int_to_ptr.vmem [resolvable:$true] %s305_s24 }
  0x5f   :  { %p494_p12 = scmp.ne.s32.totalorder %s296_s21, %s493_s25  ;;  %p498_p13 = scmp.lt.s32.totalorder %s296_s21, %s296_s21 }
  0x60   :  { %p499_p0 = scmp.lt.s32.totalorder %s493_s25, %s493_s25 }
  0x61   :  { %344 = vmatpush3.bf16.msra.mxu0 %v378_v2  ;;  %352 = vmatpush3.bf16.msra.mxu1 %v380_v4 }
  0x62   :  { %357 = vmatprep.subr.bf16.mxu0 %v576_v0  ;;  %p500_p1 = por %p499_p0, %p498_p13 }
  0x64   :  { %346 = vmatmul.mubr.msk.bf16.vlgmr.msra.gmra.mrb[0].mxu0 %vm110_vm1, %v91_v5  ;;  %354 = vmatmul.mubr.msk.bf16.vlgmr.msra.gmra.mrb[0].mxu1 %vm110_vm1, %v92_v7  ;;  %p501_p2 = pnand %p500_p1, %p494_p12 }
  0x65   :  { %358 = vmatpush3.bf16.msra.mxu0 %v381_v6  ;;  %361 = vmatprep.mubr.msk.bf16.mxu0 %vm577_vm0, %v576_v0 }
  0x66   :  { %359 = vmatprep.subr.bf16.mxu0 %v576_v0 }
  0x69   :  { %360 = vmatpush3.bf16.msra.mxu0 %v382_v8 }
  0x6c   :  { %362 = vmatmul.mubr.msk.bf16.vlgmr.msra.gmra.mrb[4].mxu0 %vm110_vm1, %v93_v9 }
 0x137   :  { %v148_v10 = vpop.f32.mrb[0].mxu0  ;;  %v207_v14 = vpop.f32.mrb[0].mxu1 }
 0x138   :  { %v272_v11 = vmul.f32 0.35355338, %v148_v10  ;;  %v347_v12 = vpop.f32.mrb[1].mxu0  ;;  %v276_v17 = vpack.c.bf16 %v207_v14, %v207_v14  ;;  %v355_v18 = vpop.f32.mrb[1].mxu1 }
 0x139   :  { %v151_v13 = vpop.f32.mrb[2].mxu0  ;;  %v210_v19 = vpop.f32.mrb[2].mxu1 }
 0x13a   :  { %v273_v15 = vpack.c.bf16 %v272_v11, %v272_v11  ;;  %v348_v16 = vpop.f32.mrb[3].mxu0  ;;  %v356_v20 = vpop.f32.mrb[3].mxu1  ;;  %277 = vst.msk [vmem:[#allocation12] sm:$0xf] %vm274_vm2, %v276_v17 }
 0x13c   :  { %275 = vst.msk [vmem:[#allocation11] sm:$0xf] %vm274_vm2, %v273_v15 }
 0x13d   :  { %504 = shalt.err (!%p501_p2)
}
 0x13e   :  { %s505_s29 = scalar_lea.hbm %s769_s7, 64 }
 0x13f   :  { %p506_p3 = scmp.ne.s32.totalorder %s769_s7, %s505_s29  ;;  %p509_p4 = scmp.lt.u32.totalorder %s505_s29, %s769_s7 }
 0x141   :  { %p511_p5 = pnand %p509_p4, %p506_p3 }
 0x143   :  { %514 = shalt.err (!%p511_p5)
}
 0x144   :  { %298 = dma.vmem_to_hbm [thread:$0]  %s296_s21, 64, %s769_s7, [#allocation13]  }
 0x145   :  { %s515_s15 = scalar_lea.vmem %s711_s23, 64  ;;  %p520_p7 = scmp.lt.s32.totalorder %s711_s23, %s711_s23 }
 0x146   :  { %p516_p6 = scmp.ne.s32.totalorder %s711_s23, %s515_s15  ;;  %p521_p8 = scmp.lt.s32.totalorder %s515_s15, %s515_s15 }
 0x148   :  { %p522_p9 = por %p521_p8, %p520_p7 }
 0x14a   :  { %p523_p10 = pnand %p522_p9, %p516_p6 }
 0x14c   :  { %526 = shalt.err (!%p523_p10)
}
 0x14d   :  { %s527_s18 = scalar_lea.hbm %s768_s6, 64 }
 0x14e   :  { %p528_p11 = scmp.ne.s32.totalorder %s768_s6, %s527_s18  ;;  %p531_p12 = scmp.lt.u32.totalorder %s527_s18, %s768_s6 }
 0x150   :  { %p533_p13 = pnand %p531_p12, %p528_p11 }
 0x152   :  { %536 = shalt.err (!%p533_p13)
}
 0x153   :  { %288 = dma.vmem_to_hbm [thread:$0]  %s711_s23, 64, %s768_s6, [#allocation4]   ;;  %v266_v21 = vpop.f32.mrb[4].mxu0 }
 0x154   :  { %278 = vst.msk [vmem:[#allocation14] sm:$0xff] %vm110_vm1, %v266_v21  ;;  %v363_v22 = vpop.f32.mrb[5].mxu0  ;;  %s537_s1 = scalar_lea.vmem %s713_s24, 128  ;;  %p542_p1 = scmp.lt.s32.totalorder %s713_s24, %s713_s24 }
 0x155   :  { %v269_v23 = vpop.f32.mrb[6].mxu0  ;;  %p538_p0 = scmp.ne.s32.totalorder %s713_s24, %s537_s1  ;;  %p543_p2 = scmp.lt.s32.totalorder %s537_s1, %s537_s1 }
 0x157   :  { %p544_p3 = por %p543_p2, %p542_p1 }
 0x159   :  { %p545_p4 = pnand %p544_p3, %p538_p0 }
 0x15b   :  { %548 = shalt.err (!%p545_p4)
}
 0x15c   :  { %s549_s20 = scalar_lea.hbm %s770_s8, 128 }
 0x15d   :  { %p550_p5 = scmp.ne.s32.totalorder %s770_s8, %s549_s20  ;;  %p553_p6 = scmp.lt.u32.totalorder %s549_s20, %s770_s8 }
 0x15f   :  { %p555_p7 = pnand %p553_p6, %p550_p5 }
 0x161   :  { %558 = shalt.err (!%p555_p7)
}
 0x162   :  { %308 = dma.vmem_to_hbm [thread:$0]  %s713_s24, 128, %s770_s8, [#allocation13]   ;;  %v364_v24 = vpop.f32.mrb[7].mxu0 }
 0x163   :  { %565 = dma.done.wait [#allocation4], 64  }
 0x164   :  { %566 = vsyncadd [#allocation4], 4294967232 }
 0x165   :  { %567 = dma.done.wait [#allocation13], 192  }
 0x166   :  { %568 = vsyncadd [#allocation13], 4294967104 }
 0x167   :  { %318 = vsyncpa [#allocation3], 1 }
 0x168   :  { %319 = vsyncpa [#allocation6], 1 }
 0x169   :  { %320 = vsyncpa [#allocation9], 1 }
 0x16a   :  { %321 = vsyncpa [#allocation4], 1 }
 0x16b   :  { %322 = vsyncpa [#allocation13], 1 }

</bundles_post_ra>
